<compile_context>
chip_gen: v7x
topology: tpu7x:2x2x1
jax: 0.10.0
libtpu: 0.0.40
codegen_flags: <defaults>
</compile_context>

<pallas_src>
import math

import jax
import jax.numpy as jnp
from jax.experimental import pallas as pl
from jax.experimental.pallas import tpu as pltpu


# ---------------------------------------------------------------------------
# Init-time helpers mirroring the PyTorch module (host-side Python math).
# ---------------------------------------------------------------------------
def softplus_inv(x):
    """Numerically stable inverse softplus: log(expm1(x)) = x + log(-expm1(-x))."""
    if x > 30.0:
        return float(x)                      # log(-expm1(-x)) ~ -exp(-x) ~ 0
    return float(x + math.log(-math.expm1(-x)))


def ml_kappa(dim, eps):
    r = 1.0 - eps
    return r * (dim - r * r) / (1.0 - r * r)


def _pick_tile(dim, preferred, aligns):
    """Largest multiple of an alignment <= `preferred` that divides `dim`; else `dim`.

    The exact-division invariant is load-bearing on the K axis (a ragged last
    reduction block would read unmasked garbage); full-array blocks are always
    legal fallbacks.
    """
    if dim <= preferred:
        return dim
    for align in aligns:
        t = (preferred // align) * align
        while t >= align:
            if dim % t == 0:
                return t
            t -= align
    return dim


def _vmem_cap_bytes():
    """Generation-aware VMEM ceiling with headroom for Mosaic internal scratch."""
    try:
        phys = int(pltpu.get_tpu_info().vmem_capacity_bytes)
        # ~96 MiB on v5e/v6e (128 MiB physical), ~48 MiB on v7x (64 MiB).
        return max(phys * 3 // 4, 32 * 1024 * 1024)
    except Exception:  # interpret mode / unknown chip: safe on every generation
        return 48 * 1024 * 1024


# ---------------------------------------------------------------------------
# Pallas kernels: tiled matmul, K innermost ("arbitrary"), scale+bias epilogue.
# ---------------------------------------------------------------------------
def _rdlinear_kernel_f32out(x_ref, w_ref, scale_ref, b_ref, o_ref):
    """f32 output: accumulate directly into o_ref (no scratch, no epilogue copy)."""
    k = pl.program_id(2)

    @pl.when(k == 0)
    def _():
        o_ref[...] = jnp.zeros_like(o_ref)

    # x: (tb, tk), w: (tk, tn) -- plain matmul, no RHS transpose needed.
    o_ref[...] += jnp.dot(x_ref[...], w_ref[...],
                          preferred_element_type=jnp.float32)

    @pl.when(k == pl.num_programs(2) - 1)
    def _():
        o_ref[...] = o_ref[...] * scale_ref[...] + b_ref[...]


def _rdlinear_kernel_scratch(x_ref, w_ref, scale_ref, b_ref, o_ref, acc_ref):
    """Low-precision output: f32 scratch accumulator, cast in the epilogue."""
    k = pl.program_id(2)

    @pl.when(k == 0)
    def _():
        acc_ref[...] = jnp.zeros_like(acc_ref)

    acc_ref[...] += jnp.dot(x_ref[...], w_ref[...],
                            preferred_element_type=jnp.float32)

    @pl.when(k == pl.num_programs(2) - 1)
    def _():
        o_ref[...] = (acc_ref[...] * scale_ref[...] + b_ref[...]).astype(o_ref.dtype)


# ---------------------------------------------------------------------------
# Wrapper(s)
# ---------------------------------------------------------------------------
def prepare_rdlinear_params(dir_loc, inv_conc, rad_mu, rad_rho, bias, *,
                            compute_dtype=jnp.bfloat16):
    """One-time parameter packing.

    Returns (w_t, scale, bias2):
      w_t   : (in, out) matmul weight (optionally bf16-resident),
      scale : (1, out) f32 fused PowerSpherical/LogNormal mean factor,
      bias2 : (1, out) f32 bias.
    Do this once per parameter update, not per forward call.
    """
    N, K = dir_loc.shape
    kappa = jax.nn.softplus(inv_conc.astype(jnp.float32).reshape(N))
    t_mean = kappa / (kappa + (K - 1.0))
    sigma = jax.nn.softplus(rad_rho.astype(jnp.float32).reshape(N))
    radius = jnp.exp(rad_mu.astype(jnp.float32).reshape(N) + 0.5 * sigma * sigma)
    scale = (t_mean * radius).reshape(1, N)
    b = jnp.zeros((N,), jnp.float32) if bias is None else bias.astype(jnp.float32)
    bias2 = b.reshape(1, N)
    w_t = dir_loc.T                                        # (in, out) layout
    if compute_dtype is not None:
        w_t = w_t.astype(compute_dtype)
    return w_t, scale, bias2


def rdlinear_forward(x, w_t, scale, bias2, *, tb=None, tn=None, tk=None,
                     out_dtype=None):
    """y = (x @ w_t) * scale + bias, with x (B, in), w_t (in, out)."""
    B, K = x.shape
    K2, N = w_t.shape
    assert K == K2, "w_t must be (in_features, out_features)"
    assert scale.shape == (1, N) and bias2.shape == (1, N)

    out_dtype = jnp.dtype(out_dtype if out_dtype is not None else x.dtype)

    # Matmul operands share the weight's dtype (bf16-resident weights recommended).
    x_mm = x if x.dtype == w_t.dtype else x.astype(w_t.dtype)
    mm_item = jnp.dtype(x_mm.dtype).itemsize
    out_item = out_dtype.itemsize
    sub = 16 if mm_item == 2 else 8            # min sublane tile (bf16 vs f32)

    auto_tb, auto_tn = tb is None, tn is None
    # 256-aligned N/K tiles keep the 256x256 MXU (v6e/v7x) fully fed; a large tk
    # amortizes the per-k accumulator read-modify-write (critical on v5e, which
    # has a single vector-store slot) and the ~0.35 us per-grid-step overhead.
    tb = tb or _pick_tile(B, 512, (sub,))
    tn = tn or _pick_tile(N, 512, (256, 128))
    tk = tk or _pick_tile(K, 2048 if mm_item == 2 else 1024, (256, 128))

    # Guarantee >=2 blocks along the parallel axes when possible so v7x's two
    # TensorCores both get work (harmless no-op on single-TC v5e/v6e).
    if (auto_tb or auto_tn) and pl.cdiv(B, tb) * pl.cdiv(N, tn) < 2:
        if auto_tn and N % 256 == 0:
            tn = N // 2
        elif auto_tb and B % (2 * sub) == 0:
            tb = B // 2

    grid = (pl.cdiv(B, tb), pl.cdiv(N, tn), pl.cdiv(K, tk))
    gb, gn, gk = grid

    use_scratch = out_dtype != jnp.float32
    kernel = _rdlinear_kernel_scratch if use_scratch else _rdlinear_kernel_f32out
    scratch = [pltpu.VMEM((tb, tn), jnp.float32)] if use_scratch else []

    # Double-buffered tiles + optional accumulator + sublane-padded scale/bias.
    vmem_need = (2 * tb * tk * mm_item            # x tiles
                 + 2 * tk * tn * mm_item          # weight tiles
                 + 2 * tb * tn * out_item         # output tiles
                 + (tb * tn * 4 if use_scratch else 0)
                 + 2 * 2 * 8 * tn * 4)            # scale + bias tiles (padded)
    vmem_limit = int(min(max(2 * vmem_need, 16 * 1024 * 1024), _vmem_cap_bytes()))

    cost = pl.CostEstimate(
        flops=2 * B * N * K,
        transcendentals=0,
        # Honest re-read factors: x is streamed once per N tile, the weight once
        # per B tile.
        bytes_accessed=int(B * K * mm_item * gn + K * N * mm_item * gb
                           + B * N * out_item + 4 * N * 4))

    return pl.pallas_call(
        kernel,
        out_shape=jax.ShapeDtypeStruct((B, N), out_dtype),
        grid_spec=pltpu.PrefetchScalarGridSpec(
            num_scalar_prefetch=0,
            grid=grid,
            in_specs=[
                pl.BlockSpec((tb, tk), lambda i, j, k: (i, k)),   # x
                pl.BlockSpec((tk, tn), lambda i, j, k: (k, j)),   # weight (in, out)
                pl.BlockSpec((1, tn), lambda i, j, k: (0, j)),    # fused column scale
                pl.BlockSpec((1, tn), lambda i, j, k: (0, j)),    # bias
            ],
            out_specs=pl.BlockSpec((tb, tn), lambda i, j, k: (i, j)),
            scratch_shapes=scratch,
        ),
        compiler_params=pltpu.CompilerParams(
            dimension_semantics=("parallel", "parallel", "arbitrary"),
            vmem_limit_bytes=vmem_limit),
        cost_estimate=cost,
    )(x_mm, w_t, scale, bias2)


def rdlinear_apply(x, dir_loc, inv_conc, rad_mu, rad_rho, bias, *,
                   compute_dtype=None, **tile_kwargs):
    """Convenience wrapper matching the module interface (packs params per call)."""
    w_t, scale, b2 = prepare_rdlinear_params(
        dir_loc, inv_conc, rad_mu, rad_rho, bias, compute_dtype=compute_dtype)
    return rdlinear_forward(x, w_t, scale, b2, **tile_kwargs)


# ---------------------------------------------------------------------------
# Pure-JAX reference for the deterministic (sample=False) forward.
# ---------------------------------------------------------------------------
def rdlinear_reference(x, dir_loc, inv_conc, rad_mu, rad_rho, bias):
    in_features = dir_loc.shape[1]
    kappa = jax.nn.softplus(inv_conc)[:, None]
    direction_mean = dir_loc * (kappa / (kappa + in_features - 1.0))
    radius_mean = jnp.exp(rad_mu + 0.5 * jax.nn.softplus(rad_rho) ** 2)
    weight = direction_mean * radius_mean
    return jnp.dot(x, weight.T, precision=jax.lax.Precision.HIGHEST) + bias


def make_params(key, in_features, out_features, ratio=0.5, eps=0.1):
    """Deterministic parameter init mirroring RDLinear.__init__."""
    k_loc, k_mu = jax.random.split(key)
    # dir_loc: kaiming_normal_ (std = sqrt(2/fan_in)) then row-normalized.
    std = math.sqrt(2.0 / in_features)
    dir_loc = std * jax.random.normal(k_loc, (out_features, in_features), jnp.float32)
    dir_loc = dir_loc / jnp.sqrt(jnp.sum(dir_loc ** 2, axis=-1, keepdims=True))
    # concentration parameter: constant softplus_inv(ml_kappa(...)).
    inv_conc = jnp.full((out_features,),
                        softplus_inv(ml_kappa(in_features, eps)), jnp.float32)
    # radius parameters.
    total_var = 2.0 / in_features
    noise_var = total_var * ratio
    mu_var = total_var - noise_var
    noise_std, mu_std = math.sqrt(noise_var), math.sqrt(mu_var)
    bound = math.sqrt(3.0) * mu_std
    rho_init = math.log(math.expm1(noise_std))
    rad_mu = jax.random.uniform(k_mu, (out_features, 1), jnp.float32, -bound, bound)
    rad_rho = jnp.full((out_features, 1), rho_init, jnp.float32)
    bias = jnp.zeros((out_features,), jnp.float32)   # uniform(0, 0)
    return dir_loc, inv_conc, rad_mu, rad_rho, bias


if __name__ == "__main__":
    key = jax.random.PRNGKey(0)
    k1, k2, kx1, kx2 = jax.random.split(key, 4)

    # --- Test 1: tiny module shapes, full-array blocks, f32 weights ---------
    params1 = make_params(k1, 32, 64)
    x1 = jax.random.normal(kx1, (8, 32), jnp.float32)
    w1, s1, b1 = prepare_rdlinear_params(*params1, compute_dtype=None)
    out1 = jax.block_until_ready(rdlinear_forward(x1, w1, s1, b1))
    ref1 = rdlinear_reference(x1, *params1)
    assert out1.shape == ref1.shape and out1.dtype == jnp.float32
    assert jnp.allclose(out1, ref1, atol=1e-2, rtol=1e-2), "f32 tiny-shape mismatch"

    # --- Test 2: multi-block grid (exercises the K accumulation path), f32 --
    params2 = make_params(k2, 512, 256)
    x2 = jax.random.normal(kx2, (64, 512), jnp.float32)
    w2, s2, b2 = prepare_rdlinear_params(*params2, compute_dtype=None)
    out2 = jax.block_until_ready(
        rdlinear_forward(x2, w2, s2, b2, tb=32, tn=128, tk=256))
    ref2 = rdlinear_reference(x2, *params2)
    assert jnp.allclose(out2, ref2, atol=3e-2, rtol=3e-2), "f32 tiled mismatch"

    # --- Test 3: bf16-resident weights (default), bf16 output (scratch path) -
    w3, s3, b3 = prepare_rdlinear_params(*params2)   # compute_dtype=bf16 default
    out3 = jax.block_until_ready(
        rdlinear_forward(x2, w3, s3, b3, tn=128, tk=256, out_dtype=jnp.bfloat16))
    assert out3.dtype == jnp.bfloat16
    assert jnp.allclose(out3.astype(jnp.float32), ref2, atol=1e-1, rtol=1e-1), \
        "bf16 tiled mismatch"

    print("KERNEL_OK")
</pallas_src>

<mosaic_0001>
module attributes {stable_mosaic.version = 11 : i64} {
  func.func @_rdlinear_kernel_f32out(%arg0: i32, %arg1: i32, %arg2: i32, %arg3: memref<8x32xf32, #tpu.memory_space<vmem>>, %arg4: memref<32x64xf32, #tpu.memory_space<vmem>>, %arg5: memref<1x64xf32, #tpu.memory_space<vmem>>, %arg6: memref<1x64xf32, #tpu.memory_space<vmem>>, %arg7: memref<8x64xf32, #tpu.memory_space<vmem>>) attributes {dimension_semantics = [#tpu.dimension_semantics<parallel>, #tpu.dimension_semantics<parallel>, #tpu.dimension_semantics<arbitrary>], iteration_bounds = array<i64: 1, 1, 1>, scalar_prefetch = 0 : i64, scratch_operands = 0 : i64, tpu.core_type = #tpu.core_type<tc>, window_params = [{transform_indices = @transform_0, window_bounds = array<i64: 8, 32>}, {transform_indices = @transform_1, window_bounds = array<i64: 32, 64>}, {transform_indices = @transform_2, window_bounds = array<i64: 1, 64>}, {transform_indices = @transform_3, window_bounds = array<i64: 1, 64>}, {transform_indices = @transform_4, window_bounds = array<i64: 8, 64>}]} {
    %c0_i32 = arith.constant 0 : i32
    %0 = arith.cmpi eq, %arg2, %c0_i32 : i32
    %1 = arith.extui %0 : i1 to i32
    %c0_i32_0 = arith.constant 0 : i32
    %2 = arith.cmpi ne, %1, %c0_i32_0 : i32
    scf.if %2 {
      %cst_10 = arith.constant 0.000000e+00 : f32
      %12 = vector.broadcast %cst_10 : f32 to vector<8x64xf32>
      %c0_11 = arith.constant 0 : index
      %c0_12 = arith.constant 0 : index
      %13 = vector.load %arg7[%c0_11, %c0_12] : memref<8x64xf32, #tpu.memory_space<vmem>>, vector<8x64xf32>
      tpu.vector_store %arg7[%c0_11, %c0_12], %12 {strides = array<i32>} : memref<8x64xf32, #tpu.memory_space<vmem>>, vector<8x64xf32>,
    } else {
    }
    %c0 = arith.constant 0 : index
    %c0_1 = arith.constant 0 : index
    %3 = vector.load %arg7[%c0, %c0_1] : memref<8x64xf32, #tpu.memory_space<vmem>>, vector<8x64xf32>
    %c0_2 = arith.constant 0 : index
    %c0_3 = arith.constant 0 : index
    %4 = vector.load %arg3[%c0_2, %c0_3] : memref<8x32xf32, #tpu.memory_space<vmem>>, vector<8x32xf32>
    %c0_4 = arith.constant 0 : index
    %c0_5 = arith.constant 0 : index
    %5 = vector.load %arg4[%c0_4, %c0_5] : memref<32x64xf32, #tpu.memory_space<vmem>>, vector<32x64xf32>
    %cst = arith.constant dense<0.000000e+00> : vector<8x64xf32>
    %6 = tpu.matmul %4, %5, %cst {dimension_numbers = #tpu.dot_dimension_numbers<[1], [0], [0], [1], [0, 0, 1, 1], [], []>} : vector<8x32xf32>, vector<32x64xf32>, vector<8x64xf32> -> vector<8x64xf32>
    %7 = arith.addf %3, %6 : vector<8x64xf32>
    %c0_6 = arith.constant 0 : index
    %c0_7 = arith.constant 0 : index
    %8 = vector.load %arg7[%c0_6, %c0_7] : memref<8x64xf32, #tpu.memory_space<vmem>>, vector<8x64xf32>
    tpu.vector_store %arg7[%c0_6, %c0_7], %7 {strides = array<i32>} : memref<8x64xf32, #tpu.memory_space<vmem>>, vector<8x64xf32>,
    %c0_i32_8 = arith.constant 0 : i32
    %9 = arith.cmpi eq, %arg2, %c0_i32_8 : i32
    %10 = arith.extui %9 : i1 to i32
    %c0_i32_9 = arith.constant 0 : i32
    %11 = arith.cmpi ne, %10, %c0_i32_9 : i32
    scf.if %11 {
      %c0_10 = arith.constant 0 : index
      %c0_11 = arith.constant 0 : index
      %12 = vector.load %arg7[%c0_10, %c0_11] : memref<8x64xf32, #tpu.memory_space<vmem>>, vector<8x64xf32>
      %c0_12 = arith.constant 0 : index
      %c0_13 = arith.constant 0 : index
      %13 = vector.load %arg5[%c0_12, %c0_13] : memref<1x64xf32, #tpu.memory_space<vmem>>, vector<1x64xf32>
      %14 = vector.broadcast %13 : vector<1x64xf32> to vector<8x64xf32>
      %15 = arith.mulf %12, %14 : vector<8x64xf32>
      %c0_14 = arith.constant 0 : index
      %c0_15 = arith.constant 0 : index
      %16 = vector.load %arg6[%c0_14, %c0_15] : memref<1x64xf32, #tpu.memory_space<vmem>>, vector<1x64xf32>
      %17 = vector.broadcast %16 : vector<1x64xf32> to vector<8x64xf32>
      %18 = arith.addf %15, %17 : vector<8x64xf32>
      %c0_16 = arith.constant 0 : index
      %c0_17 = arith.constant 0 : index
      %19 = vector.load %arg7[%c0_16, %c0_17] : memref<8x64xf32, #tpu.memory_space<vmem>>, vector<8x64xf32>
      tpu.vector_store %arg7[%c0_16, %c0_17], %18 {strides = array<i32>} : memref<8x64xf32, #tpu.memory_space<vmem>>, vector<8x64xf32>,
    } else {
    }
    return
  }
  func.func @transform_0(%arg0: i32, %arg1: i32, %arg2: i32) -> (i32, i32) {
    %c0_i32 = arith.constant 0 : i32
    return %arg0, %arg2 : i32, i32
  }
  func.func @transform_1(%arg0: i32, %arg1: i32, %arg2: i32) -> (i32, i32) {
    %c0_i32 = arith.constant 0 : i32
    return %arg2, %arg1 : i32, i32
  }
  func.func @transform_2(%arg0: i32, %arg1: i32, %arg2: i32) -> (i32, i32) {
    %c0_i32 = arith.constant 0 : i32
    %c0_i32_0 = arith.constant 0 : i32
    return %c0_i32, %arg1 : i32, i32
  }
  func.func @transform_3(%arg0: i32, %arg1: i32, %arg2: i32) -> (i32, i32) {
    %c0_i32 = arith.constant 0 : i32
    %c0_i32_0 = arith.constant 0 : i32
    return %c0_i32, %arg1 : i32, i32
  }
  func.func @transform_4(%arg0: i32, %arg1: i32, %arg2: i32) -> (i32, i32) {
    %c0_i32 = arith.constant 0 : i32
    return %arg0, %arg1 : i32, i32
  }
}

</mosaic_0001>

<bundles_post_ra>
// kernel: tpu_custom_call.1
= control target key start
LH: loop header
LB: loop body
LE: loop exit
PB: predicated region body
PF: predicated region fallthrough
CT: control target
= control target key end

     0   :  { %9 = vsyncpa [#allocation3], 0  ;;  %s360_s0 = inlined_call_operand.hbm [shape: f32[8,32], index: 0, kind: input, shape index: {}]   ;;  %s361_s1 = inlined_call_operand.hbm [shape: f32[32,64], index: 1, kind: input, shape index: {}]   ;;  %s362_s2 = inlined_call_operand.vmem [shape: f32[1,64], index: 2, kind: input, shape index: {}]   ;;  %s363_s3 = inlined_call_operand.vmem [shape: f32[1,64], index: 3, kind: input, shape index: {}]   ;;  %s364_s4 = inlined_call_operand.hbm [shape: f32[8,64], index: 4, kind: output, shape index: {}]  }
   0x1   :  { %10 = vsyncpa [#allocation6], 0 }
   0x2   :  { %11 = vsyncpa [#allocation4], 0  ;;  %s275_s15 = smov [#allocation2]   ;;  %s276_s17 = smov [#allocation5]  }
   0x3   :  { %s18_s16 = sshll.u32 %s275_s15, 4  ;;  %s27_s18 = sshll.u32 %s276_s17, 4  ;;  %s19_s16 = int_to_ptr.vmem [resolvable:$true] %s18_s16  ;;  %s308_s18 = int_to_ptr.vmem [resolvable:$true] %s27_s18 }
   0x4   :  { %s203_s21 = scalar_lea.hbm %s360_s0, 128 }
   0x5   :  { %p204_p0 = scmp.ne.s32.totalorder %s360_s0, %s203_s21  ;;  %p207_p1 = scmp.lt.u32.totalorder %s203_s21, %s360_s0 }
   0x7   :  { %p209_p2 = pnand %p207_p1, %p204_p0 }
   0x9   :  { %212 = shalt.err (!%p209_p2)
}
   0xa   :  { %s213_s26 = scalar_lea.vmem %s19_s16, 128  ;;  %p218_p4 = scmp.lt.s32.totalorder %s19_s16, %s19_s16 }
   0xb   :  { %p214_p3 = scmp.ne.s32.totalorder %s19_s16, %s213_s26  ;;  %p219_p5 = scmp.lt.s32.totalorder %s213_s26, %s213_s26 }
   0xd   :  { %p220_p6 = por %p219_p5, %p218_p4 }
   0xf   :  { %p221_p7 = pnand %p220_p6, %p214_p3 }
  0x11   :  { %224 = shalt.err (!%p221_p7)
}
  0x12   :  { %21 = dma.hbm_to_vmem [thread:$0]  %s360_s0, 128, %s19_s16, [#allocation3]  }
  0x13   :  { %s225_s5 = scalar_lea.hbm %s361_s1, 512 }
  0x14   :  { %p226_p8 = scmp.ne.s32.totalorder %s361_s1, %s225_s5  ;;  %p229_p9 = scmp.lt.u32.totalorder %s225_s5, %s361_s1 }
  0x16   :  { %p231_p10 = pnand %p229_p9, %p226_p8 }
  0x18   :  { %234 = shalt.err (!%p231_p10)
}
  0x19   :  { %s235_s10 = scalar_lea.vmem %s308_s18, 512  ;;  %p240_p12 = scmp.lt.s32.totalorder %s308_s18, %s308_s18 }
  0x1a   :  { %p236_p11 = scmp.ne.s32.totalorder %s308_s18, %s235_s10  ;;  %p241_p13 = scmp.lt.s32.totalorder %s235_s10, %s235_s10 }
  0x1c   :  { %p242_p0 = por %p241_p13, %p240_p12 }
  0x1e   :  { %p243_p1 = pnand %p242_p0, %p236_p11 }
  0x20   :  { %246 = shalt.err (!%p243_p1)
}
  0x21   :  { %s277_s0 = smov 128   ;;  %s278_s11 = smov 8  }
  0x22   :  { %33 = dma.hbm_to_vmem [thread:$0]  %s361_s1, 512, %s308_s18, [#allocation6], %s277_s0, %s277_s0, %s278_s11  }
  0x23   :  { %269 = dma.done.wait [#allocation3], 128  }
  0x24   :  { %270 = vsyncadd [#allocation3], 4294967168 }
  0x25   :  { %271 = dma.done.wait [#allocation6], 512  }
  0x26   :  { %272 = vsyncadd [#allocation6], 4294966784  ;;  %vm48_vm0 = vcmask 523264   ;;  %v279_v0 = vmov 0.0|0.0   ;;  %v280_v1 = vmov 0.0   ;;  %vm281_vm1 = vmmov 0  }
  0x27   :  { %189 = vmatprep.subr.bf16.mxu0 %v279_v0  ;;  %49 = vst.msk [vmem:[#allocation7] sm:$0xff] %vm48_vm0, %v280_v1  ;;  %186 = vmatprep.mubr.msk.f32.mxu0 %vm281_vm1, %v280_v1  ;;  %v52_v2 = vld [vmem:[#allocation5] sm:$0xff]  ;;  %v53_v3 = vld [vmem:[#allocation5 + $0x8] sm:$0xff]  ;;  %v54_v4 = vld [vmem:[#allocation5 + $0x10] sm:$0xff]  ;;  %vm56_vm2 = vcmask 261120   ;;  %s282_s17 = smov [#allocation7]  }
  0x28   :  { %v190_v5 = vpack.c.bf16 %v53_v3, %v52_v2  ;;  %v55_v6 = vld [vmem:[#allocation5 + $0x18] sm:$0xff]  ;;  %s160_s18 = sshll.u32 %s282_s17, 4  ;;  %s161_s18 = int_to_ptr.vmem [resolvable:$true] %s160_s18 }
  0x29   :  { %v193_v7 = vpack.c.bf16 %v55_v6, %v54_v4  ;;  %v51_v8 = vld [vmem:[#allocation2] sm:$0xff]  ;;  %s247_s19 = scalar_lea.vmem %s161_s18, 128  ;;  %p252_p3 = scmp.lt.s32.totalorder %s161_s18, %s161_s18 }
  0x2a   :  { %191 = vmatpush3.bf16.msra.mxu0 %v190_v5  ;;  %v171_v13 = vld [vmem:[%s362_s2] ss:$0 sm:$0xff]  ;;  %p248_p2 = scmp.ne.s32.totalorder %s161_s18, %s247_s19  ;;  %p253_p4 = scmp.lt.s32.totalorder %s247_s19, %s247_s19 }
  0x2b   :  { %192 = vmatprep.subr.bf16.mxu0 %v279_v0  ;;  %v172_v15 = vld [vmem:[%s363_s3] ss:$0 sm:$0xff] }
  0x2c   :  { %p254_p5 = por %p253_p4, %p252_p3 }
  0x2e   :  { %194 = vmatpush3.bf16.msra.mxu0 %v193_v7  ;;  %v50_v9 = vld [vmem:[#allocation7] sm:$0xff]  ;;  %p255_p6 = pnand %p254_p5, %p248_p2 }
  0x31   :  { %187 = vmatmul.mubr.msk.f32.vlgmr.msra.gmra.mrb[0].mxu0 %vm56_vm2, %v51_v8 }
 0x104   :  { %v126_v10 = vpop.f32.mrb[0].mxu0 }
 0x105   :  { %v130_v11 = vadd.f32 %v126_v10, %v50_v9  ;;  %v188_v12 = vpop.f32.mrb[1].mxu0 }
 0x107   :  { %132 = vst.msk [vmem:[#allocation7] sm:$0xff] %vm48_vm0, %v130_v11 }
 0x10e   :  { %v136_v14 = vld [vmem:[#allocation7] sm:$0xff] }
 0x10f   :  { %v144_v16 = vmul.f32 %v171_v13, %v136_v14 }
 0x111   :  { %v152_v17 = vadd.f32 %v172_v15, %v144_v16 }
 0x113   :  { %153 = vst.msk [vmem:[#allocation7] sm:$0xff] %vm48_vm0, %v152_v17 }
 0x114   :  { %258 = shalt.err (!%p255_p6)
}
 0x115   :  { %s259_s21 = scalar_lea.hbm %s364_s4, 128 }
 0x116   :  { %p260_p7 = scmp.ne.s32.totalorder %s364_s4, %s259_s21  ;;  %p263_p8 = scmp.lt.u32.totalorder %s259_s21, %s364_s4 }
 0x118   :  { %p265_p9 = pnand %p263_p8, %p260_p7 }
 0x11a   :  { %268 = shalt.err (!%p265_p9)
}
 0x11b   :  { %163 = dma.vmem_to_hbm [thread:$0]  %s161_s18, 128, %s364_s4, [#allocation4]  }
 0x11c   :  { %273 = dma.done.wait [#allocation4], 128  }
 0x11d   :  { %274 = vsyncadd [#allocation4], 4294967168 }
 0x11e   :  { %167 = vsyncpa [#allocation3], 1 }
 0x11f   :  { %168 = vsyncpa [#allocation6], 1 }
 0x120   :  { %169 = vsyncpa [#allocation4], 1 }

</bundles_post_ra>
